<compile_context>
chip_gen: v6e
topology: v6e:2x2x1
jax: 0.10.0
libtpu: 0.0.40
codegen_flags: <defaults>
</compile_context>

<pallas_src>
import jax
import jax.numpy as jnp
from jax.experimental import pallas as pl
from jax.experimental.pallas import tpu as pltpu


# --------------------------------------------------------------------------- #
# helpers
# --------------------------------------------------------------------------- #
def _round_up(x: int, m: int) -> int:
    return ((x + m - 1) // m) * m


def _pad2(a, rows, cols):
    pr, pc = rows - a.shape[0], cols - a.shape[1]
    if pr or pc:
        a = jnp.pad(a, ((0, pr), (0, pc)))
    return a


def _vmem_capacity_bytes() -> int:
    """Per-core VMEM capacity; conservative fallback is v7x's 64 MiB."""
    try:
        info = pltpu.get_tpu_info()
        cap = getattr(info, "vmem_capacity_bytes", None)
        if cap:
            return int(cap)
    except Exception:
        pass
    return 64 << 20


def _num_tensorcores() -> int:
    """v7x has 2 TensorCores per chip; v5e/v6e have 1."""
    try:
        kind = jax.devices()[0].device_kind.lower()
        if "v7" in kind or "7x" in kind:
            return 2
    except Exception:
        pass
    return 1


def _vmem_limit(needed: int, cap: int) -> int:
    limit = int(needed * 1.25) + (2 << 20)
    limit = max(limit, 32 << 20)          # don't go below the common default
    return int(min(limit, cap - (4 << 20)))   # stay under physical with headroom


def _choose_tile_m(B: int, max_tile_m: int, num_tc: int):
    """tile_m multiple of 128 for big batches (full MXU tiles), >=16 otherwise."""
    B16 = _round_up(B, 16)
    if B16 < 128:
        return B16, 1
    B128 = _round_up(B, 128)
    tile_m = min(_round_up(max_tile_m, 128), B128)
    n_tiles = pl.cdiv(B128, tile_m)
    # Only force a split when there are 2 TensorCores (v7x) and enough rows.
    if num_tc > 1 and n_tiles < num_tc and B128 >= num_tc * 128:
        tile_m = _round_up(pl.cdiv(B128, num_tc), 128)
        n_tiles = pl.cdiv(B128, tile_m)
    return tile_m, n_tiles


# --------------------------------------------------------------------------- #
# kernels
# --------------------------------------------------------------------------- #
def mlp_kernel_resident(x_ref, w1_ref, b1_ref, w2_ref, b2_ref, o_ref):
    # fc1 on the MXU: bf16 operands, f32 accumulation.
    h = jnp.dot(x_ref[...], w1_ref[...], preferred_element_type=jnp.float32)
    # Bias + ReLU epilogue on the VPU in f32.
    h = jnp.maximum(h + b1_ref[...], 0.0)
    # fc2 on the MXU.
    o = jnp.dot(h.astype(w2_ref.dtype), w2_ref[...],
                preferred_element_type=jnp.float32)
    o_ref[...] = (o + b2_ref[...]).astype(o_ref.dtype)


def mlp_kernel_htiled(x_ref, w1_ref, b1_ref, w2_ref, b2_ref, o_ref, acc_ref):
    # Grid = (batch tiles, hidden tiles); hidden axis is a reduction for fc2.
    j = pl.program_id(1)

    @pl.when(j == 0)
    def _():
        acc_ref[...] = jnp.zeros_like(acc_ref)

    h = jnp.dot(x_ref[...], w1_ref[...], preferred_element_type=jnp.float32)
    h = jnp.maximum(h + b1_ref[...], 0.0)
    acc_ref[...] += jnp.dot(h.astype(w2_ref.dtype), w2_ref[...],
                            preferred_element_type=jnp.float32)

    @pl.when(j == pl.num_programs(1) - 1)
    def _():
        o_ref[...] = (acc_ref[...] + b2_ref[...]).astype(o_ref.dtype)


# --------------------------------------------------------------------------- #
# parameter preparation (done ONCE, not per forward)
# --------------------------------------------------------------------------- #
def prepare_mlp_params(w1, b1, w2, b2, *, compute_dtype=jnp.bfloat16):
    """Pad feature dims to multiples of 128 and cast weights to the MXU dtype once.

    w1: (D_in, H); b1: (H,) or (1, H); w2: (H, D_out); b2: (D_out,) or (1, D_out).
    """
    D_in, H = w1.shape
    D_out = w2.shape[1]
    D_in_p, H_p, D_out_p = (_round_up(d, 128) for d in (D_in, H, D_out))
    b1 = jnp.reshape(b1, (1, -1))
    b2 = jnp.reshape(b2, (1, -1))
    return {
        "w1": _pad2(w1, D_in_p, H_p).astype(compute_dtype),
        "b1": _pad2(b1, 1, H_p).astype(jnp.float32),
        "w2": _pad2(w2, H_p, D_out_p).astype(compute_dtype),
        "b2": _pad2(b2, 1, D_out_p).astype(jnp.float32),
        "dims": (D_in, H, D_out),
    }


# --------------------------------------------------------------------------- #
# forward
# --------------------------------------------------------------------------- #
def mlp_forward(x, params, *, max_tile_m=256, max_tile_h=2048,
                force_h_tiling=False):
    """x: (B, D_in) f32; params from prepare_mlp_params. Returns (B, D_out)."""
    D_in, H, D_out = params["dims"]
    w1p, b1p, w2p, b2p = params["w1"], params["b1"], params["w2"], params["b2"]
    D_in_p, H_p = w1p.shape
    D_out_p = w2p.shape[1]

    B, xf = x.shape
    assert xf == D_in, "x feature dim does not match fc1 in_features"
    out_dtype = x.dtype
    compute_dtype = w1p.dtype
    cbytes = jnp.dtype(compute_dtype).itemsize
    obytes = jnp.dtype(out_dtype).itemsize

    num_tc = _num_tensorcores()
    vmem_cap = _vmem_capacity_bytes()
    tile_m, n_tiles_m = _choose_tile_m(B, max_tile_m, num_tc)
    B_p = tile_m * n_tiles_m
    xp = _pad2(x, B_p, D_in_p).astype(compute_dtype)

    # VMEM footprint of the "weights resident in VMEM" strategy
    # (W1/W2/b1/b2 single-buffered via pl.Buffered(1)).
    resident_bytes = (
        (D_in_p * H_p + H_p * D_out_p) * cbytes      # W1 + W2 (x1 buffer each)
        + (H_p + D_out_p) * 4                        # b1 + b2 (x1 buffer each)
        + 2 * tile_m * D_in_p * cbytes               # x tile (double-buffered)
        + 2 * tile_m * D_out_p * obytes              # out tile (double-buffered)
        + tile_m * H_p * (4 + cbytes)                # h in f32 + its bf16 copy
        + tile_m * D_out_p * 4                       # fc2 f32 result pre-cast
    )
    use_resident = (not force_h_tiling) and resident_bytes <= int(0.8 * vmem_cap)

    flops = 2 * B_p * (D_in_p * H_p + H_p * D_out_p)
    bytes_accessed = (xp.size * cbytes + w1p.size * cbytes + w2p.size * cbytes
                      + b1p.size * 4 + b2p.size * 4 + B_p * D_out_p * obytes)
    cost = pl.CostEstimate(flops=flops, transcendentals=0,
                           bytes_accessed=bytes_accessed)

    if use_resident:
        out_p = pl.pallas_call(
            mlp_kernel_resident,
            out_shape=jax.ShapeDtypeStruct((B_p, D_out_p), out_dtype),
            grid_spec=pltpu.PrefetchScalarGridSpec(
                num_scalar_prefetch=0,
                grid=(n_tiles_m,),
                in_specs=[
                    pl.BlockSpec((tile_m, D_in_p), lambda i: (i, 0)),
                    pl.BlockSpec((D_in_p, H_p), lambda i: (0, 0),
                                 pipeline_mode=pl.Buffered(1)),
                    pl.BlockSpec((1, H_p), lambda i: (0, 0),
                                 pipeline_mode=pl.Buffered(1)),
                    pl.BlockSpec((H_p, D_out_p), lambda i: (0, 0),
                                 pipeline_mode=pl.Buffered(1)),
                    pl.BlockSpec((1, D_out_p), lambda i: (0, 0),
                                 pipeline_mode=pl.Buffered(1)),
                ],
                out_specs=pl.BlockSpec((tile_m, D_out_p), lambda i: (i, 0)),
            ),
            compiler_params=pltpu.CompilerParams(
                dimension_semantics=("parallel",),
                vmem_limit_bytes=_vmem_limit(resident_bytes, vmem_cap)),
            cost_estimate=cost,
        )(xp, w1p, b1p, w2p, b2p)
        return out_p[:B, :D_out]

    # ---- fallback: stream W1/W2 in hidden-dim tiles, accumulate fc2 in VMEM ----
    def htile_bytes(th):
        return (2 * (D_in_p * th + th * D_out_p) * cbytes   # W1/W2 tiles (dbl-buf)
                + 2 * th * 4 + D_out_p * 4                  # b1 tiles + b2
                + 2 * tile_m * D_in_p * cbytes               # x tile (dbl-buf)
                + 2 * tile_m * D_out_p * obytes              # out tile (dbl-buf)
                + tile_m * D_out_p * 4                       # f32 accumulator
                + tile_m * th * (4 + cbytes)                 # h f32 + bf16 copy
                + tile_m * D_out_p * 4)                      # fc2 partial f32

    tile_h = min(_round_up(max_tile_h, 128), H_p)
    while tile_h > 128 and htile_bytes(tile_h) > int(0.8 * vmem_cap):
        tile_h -= 128
    n_h = pl.cdiv(H_p, tile_h)
    H_pp = n_h * tile_h
    if H_pp != H_p:  # re-pad hidden dim so tile_h divides it exactly (zeros exact)
        w1p = _pad2(w1p, D_in_p, H_pp)
        b1p = _pad2(b1p, 1, H_pp)
        w2p = _pad2(w2p, H_pp, D_out_p)

    out_p = pl.pallas_call(
        mlp_kernel_htiled,
        out_shape=jax.ShapeDtypeStruct((B_p, D_out_p), out_dtype),
        grid_spec=pltpu.PrefetchScalarGridSpec(
            num_scalar_prefetch=0,
            grid=(n_tiles_m, n_h),
            in_specs=[
                pl.BlockSpec((tile_m, D_in_p), lambda i, j: (i, 0)),
                pl.BlockSpec((D_in_p, tile_h), lambda i, j: (0, j)),
                pl.BlockSpec((1, tile_h), lambda i, j: (0, j)),
                pl.BlockSpec((tile_h, D_out_p), lambda i, j: (j, 0)),
                pl.BlockSpec((1, D_out_p), lambda i, j: (0, 0),
                             pipeline_mode=pl.Buffered(1)),
            ],
            out_specs=pl.BlockSpec((tile_m, D_out_p), lambda i, j: (i, 0)),
            scratch_shapes=[pltpu.VMEM((tile_m, D_out_p), jnp.float32)],
        ),
        compiler_params=pltpu.CompilerParams(
            dimension_semantics=("parallel", "arbitrary"),
            vmem_limit_bytes=_vmem_limit(htile_bytes(tile_h), vmem_cap)),
        cost_estimate=cost,
    )(xp, w1p, b1p, w2p, b2p)
    return out_p[:B, :D_out]


# --------------------------------------------------------------------------- #
# init + test
# --------------------------------------------------------------------------- #
def init_mlp_params(key, input_size, hidden_size, output_size, dtype=jnp.float32):
    """Deterministic init mimicking nn.Linear default (uniform +-1/sqrt(fan_in)).
    Weights stored as (in_features, out_features) = PyTorch weight transposed."""
    k1, k2, k3, k4 = jax.random.split(key, 4)
    bound1 = 1.0 / (input_size ** 0.5)
    bound2 = 1.0 / (hidden_size ** 0.5)
    w1 = jax.random.uniform(k1, (input_size, hidden_size), dtype, -bound1, bound1)
    b1 = jax.random.uniform(k2, (1, hidden_size), dtype, -bound1, bound1)
    w2 = jax.random.uniform(k3, (hidden_size, output_size), dtype, -bound2, bound2)
    b2 = jax.random.uniform(k4, (1, output_size), dtype, -bound2, bound2)
    return w1, b1, w2, b2


def _ref_bf16(x, w1, b1, w2, b2):
    """Reference with the same bf16-operand / f32-accumulate policy (tight check)."""
    xb, w1b, w2b = (x.astype(jnp.bfloat16), w1.astype(jnp.bfloat16),
                    w2.astype(jnp.bfloat16))
    h = jnp.maximum(jnp.dot(xb, w1b, preferred_element_type=jnp.float32) + b1, 0.0)
    return jnp.dot(h.astype(jnp.bfloat16), w2b,
                   preferred_element_type=jnp.float32) + b2


def _ref_f32(x, w1, b1, w2, b2):
    """Pure-f32 PyTorch-style reference (loose check: bf16 MXU operands)."""
    return jnp.maximum(x @ w1 + b1, 0.0) @ w2 + b2


if __name__ == "__main__":
    key = jax.random.PRNGKey(0)
    kx, kp, kx2, kp2 = jax.random.split(key, 4)

    # ---- test 1: small MLP, resident-weights path --------------------------
    batch, input_size, hidden_size, output_size = 16, 32, 64, 16
    x = jax.random.normal(kx, (batch, input_size), dtype=jnp.float32)
    w1, b1, w2, b2 = init_mlp_params(kp, input_size, hidden_size, output_size)
    params = prepare_mlp_params(w1, b1, w2, b2)   # pad + bf16-cast ONCE

    out = jax.block_until_ready(mlp_forward(x, params))
    assert out.shape == (batch, output_size)
    assert jnp.allclose(out, _ref_bf16(x, w1, b1, w2, b2), atol=2e-3, rtol=2e-3)
    assert jnp.allclose(out, _ref_f32(x, w1, b1, w2, b2), atol=3e-2, rtol=3e-2)

    # ---- test 2: odd shapes + forced H-tiled fallback path ------------------
    batch2, in2, hid2, outd2 = 40, 48, 300, 24
    x2 = jax.random.normal(kx2, (batch2, in2), dtype=jnp.float32)
    w1b, b1b, w2b, b2b = init_mlp_params(kp2, in2, hid2, outd2)
    params2 = prepare_mlp_params(w1b, b1b, w2b, b2b)
    out2 = jax.block_until_ready(
        mlp_forward(x2, params2, force_h_tiling=True, max_tile_h=128))
    assert out2.shape == (batch2, outd2)
    assert jnp.allclose(out2, _ref_bf16(x2, w1b, b1b, w2b, b2b), atol=5e-3, rtol=5e-3)
    assert jnp.allclose(out2, _ref_f32(x2, w1b, b1b, w2b, b2b), atol=5e-2, rtol=5e-2)

    print("KERNEL_OK")
</pallas_src>

<mosaic_0001>
module attributes {stable_mosaic.version = 11 : i64} {
  func.func @mlp_kernel_resident(%arg0: i32, %arg1: memref<16x128xbf16, #tpu.memory_space<vmem>>, %arg2: memref<128x128xbf16, #tpu.memory_space<vmem>>, %arg3: memref<1x128xf32, #tpu.memory_space<vmem>>, %arg4: memref<128x128xbf16, #tpu.memory_space<vmem>>, %arg5: memref<1x128xf32, #tpu.memory_space<vmem>>, %arg6: memref<16x128xf32, #tpu.memory_space<vmem>>) attributes {dimension_semantics = [#tpu.dimension_semantics<parallel>], iteration_bounds = array<i64: 1>, scalar_prefetch = 0 : i64, scratch_operands = 0 : i64, tpu.core_type = #tpu.core_type<tc>, window_params = [{transform_indices = @transform_0, window_bounds = array<i64: 16, 128>}, {pipeline_mode = #tpu.pipeline_mode<synchronous>, transform_indices = @transform_1, window_bounds = array<i64: 128, 128>}, {pipeline_mode = #tpu.pipeline_mode<synchronous>, transform_indices = @transform_2, window_bounds = array<i64: 1, 128>}, {pipeline_mode = #tpu.pipeline_mode<synchronous>, transform_indices = @transform_3, window_bounds = array<i64: 128, 128>}, {pipeline_mode = #tpu.pipeline_mode<synchronous>, transform_indices = @transform_4, window_bounds = array<i64: 1, 128>}, {transform_indices = @transform_5, window_bounds = array<i64: 16, 128>}]} {
    %c0 = arith.constant 0 : index
    %c0_0 = arith.constant 0 : index
    %0 = vector.load %arg1[%c0, %c0_0] : memref<16x128xbf16, #tpu.memory_space<vmem>>, vector<16x128xbf16>
    %c0_1 = arith.constant 0 : index
    %c0_2 = arith.constant 0 : index
    %1 = vector.load %arg2[%c0_1, %c0_2] : memref<128x128xbf16, #tpu.memory_space<vmem>>, vector<128x128xbf16>
    %cst = arith.constant dense<0.000000e+00> : vector<16x128xf32>
    %2 = tpu.matmul %0, %1, %cst {dimension_numbers = #tpu.dot_dimension_numbers<[1], [0], [0], [1], [0, 0, 1, 1], [], []>} : vector<16x128xbf16>, vector<128x128xbf16>, vector<16x128xf32> -> vector<16x128xf32>
    %c0_3 = arith.constant 0 : index
    %c0_4 = arith.constant 0 : index
    %3 = vector.load %arg3[%c0_3, %c0_4] : memref<1x128xf32, #tpu.memory_space<vmem>>, vector<1x128xf32>
    %4 = vector.broadcast %3 : vector<1x128xf32> to vector<16x128xf32>
    %5 = arith.addf %2, %4 : vector<16x128xf32>
    %cst_5 = arith.constant 0.000000e+00 : f32
    %6 = vector.broadcast %cst_5 : f32 to vector<16x128xf32>
    %7 = arith.maximumf %5, %6 : vector<16x128xf32>
    %8 = arith.truncf %7 : vector<16x128xf32> to vector<16x128xbf16>
    %c0_6 = arith.constant 0 : index
    %c0_7 = arith.constant 0 : index
    %9 = vector.load %arg4[%c0_6, %c0_7] : memref<128x128xbf16, #tpu.memory_space<vmem>>, vector<128x128xbf16>
    %cst_8 = arith.constant dense<0.000000e+00> : vector<16x128xf32>
    %10 = tpu.matmul %8, %9, %cst_8 {dimension_numbers = #tpu.dot_dimension_numbers<[1], [0], [0], [1], [0, 0, 1, 1], [], []>} : vector<16x128xbf16>, vector<128x128xbf16>, vector<16x128xf32> -> vector<16x128xf32>
    %c0_9 = arith.constant 0 : index
    %c0_10 = arith.constant 0 : index
    %11 = vector.load %arg5[%c0_9, %c0_10] : memref<1x128xf32, #tpu.memory_space<vmem>>, vector<1x128xf32>
    %12 = vector.broadcast %11 : vector<1x128xf32> to vector<16x128xf32>
    %13 = arith.addf %10, %12 : vector<16x128xf32>
    %c0_11 = arith.constant 0 : index
    %c0_12 = arith.constant 0 : index
    %14 = vector.load %arg6[%c0_11, %c0_12] : memref<16x128xf32, #tpu.memory_space<vmem>>, vector<16x128xf32>
    tpu.vector_store %arg6[%c0_11, %c0_12], %13 {strides = array<i32>} : memref<16x128xf32, #tpu.memory_space<vmem>>, vector<16x128xf32>,
    return
  }
  func.func @transform_0(%arg0: i32) -> (i32, i32) {
    %c0_i32 = arith.constant 0 : i32
    %c0_i32_0 = arith.constant 0 : i32
    return %arg0, %c0_i32 : i32, i32
  }
  func.func @transform_1(%arg0: i32) -> (i32, i32) {
    %c0_i32 = arith.constant 0 : i32
    %c0_i32_0 = arith.constant 0 : i32
    %c0_i32_1 = arith.constant 0 : i32
    return %c0_i32, %c0_i32_0 : i32, i32
  }
  func.func @transform_2(%arg0: i32) -> (i32, i32) {
    %c0_i32 = arith.constant 0 : i32
    %c0_i32_0 = arith.constant 0 : i32
    %c0_i32_1 = arith.constant 0 : i32
    return %c0_i32, %c0_i32_0 : i32, i32
  }
  func.func @transform_3(%arg0: i32) -> (i32, i32) {
    %c0_i32 = arith.constant 0 : i32
    %c0_i32_0 = arith.constant 0 : i32
    %c0_i32_1 = arith.constant 0 : i32
    return %c0_i32, %c0_i32_0 : i32, i32
  }
  func.func @transform_4(%arg0: i32) -> (i32, i32) {
    %c0_i32 = arith.constant 0 : i32
    %c0_i32_0 = arith.constant 0 : i32
    %c0_i32_1 = arith.constant 0 : i32
    return %c0_i32, %c0_i32_0 : i32, i32
  }
  func.func @transform_5(%arg0: i32) -> (i32, i32) {
    %c0_i32 = arith.constant 0 : i32
    %c0_i32_0 = arith.constant 0 : i32
    return %arg0, %c0_i32 : i32, i32
  }
}

</mosaic_0001>

<bundles_post_ra>
// kernel: tpu_custom_call.1
= control target key start
LH: loop header
LB: loop body
LE: loop exit
PB: predicated region body
PF: predicated region fallthrough
CT: control target
= control target key end

     0   :  { %10 = vsyncpa [#allocation3], 0  ;;  %s566_s0 = inlined_call_operand.hbm [shape: bf16[16,128], index: 0, kind: input, shape index: {}]   ;;  %s567_s1 = inlined_call_operand.hbm [shape: bf16[128,128], index: 1, kind: input, shape index: {}]   ;;  %s568_s2 = inlined_call_operand.vmem [shape: f32[1,128], index: 2, kind: input, shape index: {}]   ;;  %s569_s3 = inlined_call_operand.hbm [shape: bf16[128,128], index: 3, kind: input, shape index: {}]   ;;  %s570_s4 = inlined_call_operand.vmem [shape: f32[1,128], index: 4, kind: input, shape index: {}]   ;;  %s571_s5 = inlined_call_operand.hbm [shape: f32[16,128], index: 5, kind: output, shape index: {}]  }
   0x1   :  { %11 = vsyncpa [#allocation6], 0 }
   0x2   :  { %12 = vsyncpa [#allocation4], 0  ;;  %s508_s18 = smov [#allocation5]   ;;  %s509_s20 = smov [#allocation2]  }
   0x3   :  { %s30_s19 = sshll.u32 %s508_s18, 4  ;;  %s18_s21 = sshll.u32 %s509_s20, 4  ;;  %s31_s19 = int_to_ptr.vmem [resolvable:$true] %s30_s19  ;;  %s19_s21 = int_to_ptr.vmem [resolvable:$true] %s18_s21 }
   0x4   :  { %s430_s22 = scalar_lea.vmem %s31_s19, 1024  ;;  %p435_p1 = scmp.lt.s32.totalorder %s31_s19, %s31_s19 }
   0x5   :  { %p431_p0 = scmp.ne.s32.totalorder %s31_s19, %s430_s22  ;;  %p436_p2 = scmp.lt.s32.totalorder %s430_s22, %s430_s22 }
   0x7   :  { %p437_p3 = por %p436_p2, %p435_p1 }
   0x9   :  { %p438_p4 = pnand %p437_p3, %p431_p0 }
   0xb   :  { %441 = shalt.err (!%p438_p4)
}
   0xc   :  { %s510_s23 = smov 64   ;;  %s511_s24 = smov 4  }
   0xd   :  { %36 = dma.hbm_to_vmem [thread:$0]  %s567_s1, 1024, %s31_s19, [#allocation6], %s510_s23, %s510_s23, %s511_s24  }
   0xe   :  { %s450_s27 = scalar_lea.vmem %s19_s21, 128  ;;  %p455_p6 = scmp.lt.s32.totalorder %s19_s21, %s19_s21 }
   0xf   :  { %p451_p5 = scmp.ne.s32.totalorder %s19_s21, %s450_s27  ;;  %p456_p7 = scmp.lt.s32.totalorder %s450_s27, %s450_s27 }
  0x11   :  { %p457_p8 = por %p456_p7, %p455_p6 }
  0x13   :  { %p458_p9 = pnand %p457_p8, %p451_p5 }
  0x15   :  { %461 = shalt.err (!%p458_p9)
}
  0x16   :  { %24 = dma.hbm_to_vmem [thread:$0]  %s566_s0, 128, %s19_s21, [#allocation3], %s510_s23, %s510_s23, %s511_s24  }
  0x17   :  { %s512_s30 = smov [#allocation7]  }
  0x18   :  { %s44_s6 = sshll.u32 %s512_s30, 4  ;;  %s45_s6 = int_to_ptr.vmem [resolvable:$true] %s44_s6 }
  0x19   :  { %s470_s7 = scalar_lea.vmem %s45_s6, 1024  ;;  %p475_p11 = scmp.lt.s32.totalorder %s45_s6, %s45_s6 }
  0x1a   :  { %p471_p10 = scmp.ne.s32.totalorder %s45_s6, %s470_s7  ;;  %p476_p12 = scmp.lt.s32.totalorder %s470_s7, %s470_s7 }
  0x1c   :  { %p477_p13 = por %p476_p12, %p475_p11 }
  0x1e   :  { %p478_p0 = pnand %p477_p13, %p471_p10 }
  0x20   :  { %481 = shalt.err (!%p478_p0)
}
  0x21   :  { %50 = dma.hbm_to_vmem [thread:$0]  %s569_s3, 1024, %s45_s6, [#allocation6], %s510_s23, %s510_s23, %s511_s24  }
  0x22   :  { %502 = dma.done.wait [#allocation3], 128  }
  0x23   :  { %503 = vsyncadd [#allocation3], 4294967168 }
  0x24   :  { %504 = dma.done.wait [#allocation6], 2048  }
  0x25   :  { %505 = vsyncadd [#allocation6], 4294965248  ;;  %v513_v0 = vmov 0.0   ;;  %vm514_vm0 = vmmov 0   ;;  %v405_v1 = vld [vmem:[#allocation5 + $0x38] sm:$0xff]   ;;  %v406_v2 = vld [vmem:[#allocation5 + $0x30] sm:$0xff]  }
  0x26   :  { %355 = vmatprep.subr.bf16.mxu0 %v513_v0  ;;  %371 = vmatprep.mubr.msk.bf16.mxu0 %vm514_vm0, %v513_v0  ;;  %v407_v3 = vld [vmem:[#allocation5 + $0x28] sm:$0xff]   ;;  %v414_v4 = vld [vmem:[#allocation7 + $0x38] sm:$0xff]   ;;  %v408_v5 = vld [vmem:[#allocation5 + $0x20] sm:$0xff]   ;;  %s515_s11 = smov [#allocation8]  }
  0x27   :  { %375 = vmatprep.subr.bf16.mxu1 %v513_v0  ;;  %391 = vmatprep.mubr.msk.bf16.mxu1 %vm514_vm0, %v513_v0  ;;  %v415_v6 = vld [vmem:[#allocation7 + $0x30] sm:$0xff]   ;;  %v409_v7 = vld [vmem:[#allocation5 + $0x18] sm:$0xff]   ;;  %v416_v8 = vld [vmem:[#allocation7 + $0x28] sm:$0xff]   ;;  %s305_s12 = sshll.u32 %s515_s11, 4  ;;  %s306_s12 = int_to_ptr.vmem [resolvable:$true] %s305_s12 }
  0x28   :  { %356 = vmatpush3.bf16.msra.mxu0 %v405_v1  ;;  %376 = vmatpush3.bf16.msra.mxu1 %v414_v4  ;;  %v410_v9 = vld [vmem:[#allocation5 + $0x10] sm:$0xff]   ;;  %v417_v10 = vld [vmem:[#allocation7 + $0x20] sm:$0xff]   ;;  %v411_v11 = vld [vmem:[#allocation5 + $0x8] sm:$0xff]   ;;  %p487_p2 = scmp.lt.s32.totalorder %s306_s12, %s306_s12 }
  0x29   :  { %357 = vmatprep.subr.bf16.mxu0 %v513_v0  ;;  %377 = vmatprep.subr.bf16.mxu1 %v513_v0  ;;  %v418_v12 = vld [vmem:[#allocation7 + $0x18] sm:$0xff]   ;;  %v412_v13 = vld [vmem:[#allocation5] sm:$0xff]   ;;  %v419_v15 = vld [vmem:[#allocation7 + $0x10] sm:$0xff]  }
  0x2a   :  { %v413_v14 = vld [vmem:[#allocation2] sm:$0xff]   ;;  %v420_v16 = vld [vmem:[#allocation7 + $0x8] sm:$0xff]   ;;  %v421_v17 = vld [vmem:[#allocation7] sm:$0xff]  }
  0x2b   :  { %v318_v18 = vld [vmem:[%s568_s2] ss:$0 sm:$0xff]  ;;  %s482_s2 = scalar_lea.vmem %s306_s12, 256 }
  0x2c   :  { %358 = vmatpush3.bf16.msra.mxu0 %v406_v2  ;;  %378 = vmatpush3.bf16.msra.mxu1 %v415_v6  ;;  %v328_v28 = vld [vmem:[%s570_s4] ss:$0 sm:$0xff]  ;;  %p483_p1 = scmp.ne.s32.totalorder %s306_s12, %s482_s2  ;;  %p488_p3 = scmp.lt.s32.totalorder %s482_s2, %s482_s2 }
  0x2d   :  { %359 = vmatprep.subr.bf16.mxu0 %v513_v0  ;;  %379 = vmatprep.subr.bf16.mxu1 %v513_v0 }
  0x2e   :  { %p489_p4 = por %p488_p3, %p487_p2 }
  0x30   :  { %360 = vmatpush3.bf16.msra.mxu0 %v407_v3  ;;  %380 = vmatpush3.bf16.msra.mxu1 %v416_v8  ;;  %p490_p5 = pnand %p489_p4, %p483_p1 }
  0x31   :  { %361 = vmatprep.subr.bf16.mxu0 %v513_v0  ;;  %381 = vmatprep.subr.bf16.mxu1 %v513_v0 }
  0x34   :  { %362 = vmatpush3.bf16.msra.mxu0 %v408_v5  ;;  %382 = vmatpush3.bf16.msra.mxu1 %v417_v10 }
  0x35   :  { %363 = vmatprep.subr.bf16.mxu0 %v513_v0  ;;  %383 = vmatprep.subr.bf16.mxu1 %v513_v0 }
  0x38   :  { %364 = vmatpush3.bf16.msra.mxu0 %v409_v7  ;;  %384 = vmatpush3.bf16.msra.mxu1 %v418_v12 }
  0x39   :  { %365 = vmatprep.subr.bf16.mxu0 %v513_v0  ;;  %385 = vmatprep.subr.bf16.mxu1 %v513_v0 }
  0x3c   :  { %366 = vmatpush3.bf16.msra.mxu0 %v410_v9  ;;  %386 = vmatpush3.bf16.msra.mxu1 %v419_v15 }
  0x3d   :  { %367 = vmatprep.subr.bf16.mxu0 %v513_v0  ;;  %387 = vmatprep.subr.bf16.mxu1 %v513_v0 }
  0x40   :  { %368 = vmatpush3.bf16.msra.mxu0 %v411_v11  ;;  %388 = vmatpush3.bf16.msra.mxu1 %v420_v16 }
  0x41   :  { %369 = vmatprep.subr.bf16.mxu0 %v513_v0  ;;  %389 = vmatprep.subr.bf16.mxu1 %v513_v0 }
  0x44   :  { %370 = vmatpush3.bf16.msra.mxu0 %v412_v13  ;;  %390 = vmatpush3.bf16.msra.mxu1 %v421_v17 }
  0x47   :  { %372 = vmatmul.mubr.bf16.vlgmr.msra.gmra.mxu0 %v413_v14 }
 0x107   :  { %v176_v19 = vpop.f32.mrf.mxu0 }
 0x108   :  { %v177_v21 = vadd.f32 %v318_v18, %v176_v19 }
 0x109   :  { %v373_v20 = vpop.f32.mrf.mxu0 }
 0x10a   :  { %v183_v25 = vmax.f32 %v177_v21, 0.0 }
 0x10b   :  { %v179_v22 = vpop.f32.mrf.mxu0 }
 0x10c   :  { %v180_v23 = vadd.f32 %v318_v18, %v179_v22 }
 0x10d   :  { %v374_v24 = vpop.f32.mrf.mxu0 }
 0x10e   :  { %v184_v26 = vmax.f32 %v180_v23, 0.0 }
 0x110   :  { %v185_v27 = vpack.c.bf16 %v184_v26, %v183_v25 }
 0x112   :  { %392 = vmatmul.mubr.bf16.vlgmr.msra.gmra.mxu1 %v185_v27 }
 0x1d2   :  { %v291_v29 = vpop.f32.mrf.mxu1 }
 0x1d3   :  { %v292_v30 = vadd.f32 %v328_v28, %v291_v29 }
 0x1d4   :  { %v393_v31 = vpop.f32.mrf.mxu1 }
 0x1d5   :  { %298 = vst [vmem:[#allocation8] sm:$0xff] %v292_v30 }
 0x1d6   :  { %v294_v32 = vpop.f32.mrf.mxu1 }
 0x1d7   :  { %v295_v33 = vadd.f32 %v328_v28, %v294_v32 }
 0x1d8   :  { %v394_v34 = vpop.f32.mrf.mxu1 }
 0x1d9   :  { %299 = vst [vmem:[#allocation8 + $0x8] sm:$0xff] %v295_v33 }
 0x1da   :  { %493 = shalt.err (!%p490_p5)
}
 0x1db   :  { %s516_s13 = smov 128   ;;  %s517_s4 = smov 8  }
 0x1dc   :  { %311 = dma.vmem_to_hbm [thread:$0]  %s306_s12, 256, %s571_s5, [#allocation4], %s516_s13, %s516_s13, %s517_s4  }
 0x1dd   :  { %506 = dma.done.wait [#allocation4], 256  }
 0x1de   :  { %507 = vsyncadd [#allocation4], 4294967040 }
 0x1df   :  { %315 = vsyncpa [#allocation3], 1 }
 0x1e0   :  { %316 = vsyncpa [#allocation6], 1 }
 0x1e1   :  { %317 = vsyncpa [#allocation4], 1 }

</bundles_post_ra>
